<compile_context>
chip_gen: v7x
topology: tpu7x:2x2x1
jax: 0.10.0
libtpu: 0.0.40
codegen_flags: <defaults>
</compile_context>

<pallas_src>
import functools

import jax
import jax.numpy as jnp
from jax.experimental import pallas as pl
from jax.experimental.pallas import tpu as pltpu

_EPS = 1e-5
_NEG_SLOPE = 0.2


def _round_up(a, b):
    return (a + b - 1) // b * b


# ------------------------------- kernels -------------------------------------


def _write_partial_stats(stats_ref, z):
    """Per-tile channel sum (row 0) and sum-of-squares (row 1) of f32 z.

    Note: BN variance is later formed as E[z^2] - E[z]^2 in f32; fine for conv
    activations (|mean| ~ std), documented per review.
    """
    s = jnp.sum(z, axis=0, keepdims=True)          # (1, Cout_p)
    ss = jnp.sum(z * z, axis=0, keepdims=True)     # (1, Cout_p)
    rows = jax.lax.broadcasted_iota(jnp.int32, stats_ref.shape, 0)
    stats_ref[...] = jnp.where(rows == 0, s, jnp.where(rows == 1, ss, 0.0))


def _phase1_z_kernel(patch_ref, w_ref, z_ref, stats_ref):
    # patch_ref: (tile_m, K_p) bf16   w_ref: (K_p, Cout_p) bf16
    # z_ref: (tile_m, Cout_p) f32 (out=True) or bf16 (out=False, large-K path)
    # stats_ref: (8, Cout_p) f32 per-tile partials.
    z = jnp.dot(patch_ref[...], w_ref[...], preferred_element_type=jnp.float32)
    z_ref[...] = z.astype(z_ref.dtype)
    _write_partial_stats(stats_ref, z)


def _phase1_stats_kernel(patch_ref, w_ref, stats_ref):
    # out=False small-K path: only the per-tile BN partials go to HBM.
    z = jnp.dot(patch_ref[...], w_ref[...], preferred_element_type=jnp.float32)
    _write_partial_stats(stats_ref, z)


def _phase2_from_z_kernel(z_ref, scale_ref, shift_ref, y_ref):
    # Fused affine (gamma*rsqrt folded into scale, mean/beta into shift) + LeakyReLU.
    zb = z_ref[...].astype(jnp.float32) * scale_ref[...] + shift_ref[...]
    y_ref[...] = jnp.where(zb >= 0, zb, _NEG_SLOPE * zb).astype(y_ref.dtype)


def _phase2_recompute_kernel(patch_ref, w_ref, scale_ref, shift_ref, y_ref):
    # out=False small-K path: recompute z (cheaper than a z round-trip here).
    z = jnp.dot(patch_ref[...], w_ref[...], preferred_element_type=jnp.float32)
    zb = z * scale_ref[...] + shift_ref[...]
    y_ref[...] = jnp.where(zb >= 0, zb, _NEG_SLOPE * zb).astype(y_ref.dtype)


# ------------------------------ host helpers ---------------------------------


def _im2col_s2_k4_p1_nhwc(x_nchw):
    """(N, C, H, W) -> bf16 patches (N*Ho*Wo, 16*C), flatten order (kh, kw, C)."""
    n, c, h, w = x_nchw.shape
    ho, wo = h // 2, w // 2
    # Cast to bf16 BEFORE building the 16x-duplicated array (halves its HBM cost).
    x_nhwc = jnp.transpose(x_nchw, (0, 2, 3, 1)).astype(jnp.bfloat16)
    xp = jnp.pad(x_nhwc, ((0, 0), (1, 1), (1, 1), (0, 0)))
    cols = []
    for kh in range(4):
        for kw in range(4):
            cols.append(xp[:, kh:kh + 2 * ho:2, kw:kw + 2 * wo:2, :])  # (N,Ho,Wo,C)
    p = jnp.stack(cols, axis=3)                                        # (N,Ho,Wo,16,C)
    return p.reshape(n * ho * wo, 16 * c), (n, ho, wo)


def _vmem_limit_bytes():
    # Use ~half of physical VMEM as the scoped limit: 64 MiB on v5e/v6e (128 MiB
    # physical), 32 MiB on v7x (64 MiB physical). Fallback keeps all gens safe.
    try:
        cap = int(pltpu.get_tpu_info().vmem_capacity_bytes)
    except Exception:
        cap = 64 * 1024 * 1024
    return int(max(min(cap // 2, 96 * 1024 * 1024), 32 * 1024 * 1024))


def _make_weight_spec(k_p, c_out_p):
    """Weights: constant index_map -> single-buffered. Returns (spec, n_buffers)."""
    idx = lambda i: (0, 0)
    try:
        return pl.BlockSpec((k_p, c_out_p), idx, pipeline_mode=pl.Buffered(1)), 1
    except Exception:  # older API without pipeline_mode: budget for double buffer
        return pl.BlockSpec((k_p, c_out_p), idx), 2


def _pick_tile_m(m, per_row_bytes, weight_bytes, vmem_limit):
    headroom = 2 * 1024 * 1024  # stats blocks, scale/shift, compiler scratch
    avail = vmem_limit - weight_bytes - headroom
    tile = max(avail // max(per_row_bytes, 1), 8)
    tile = min(tile, 2048)
    if m > 8:
        # Guarantee >= 2 grid steps: keeps double-buffer pipelining meaningful and
        # lets dimension_semantics=("parallel",) actually split across v7x cores.
        tile = min(tile, _round_up(-(-m // 2), 8))
    return max((tile // 8) * 8, 8)


# ------------------------------- entry point ----------------------------------


@functools.partial(jax.jit, static_argnames=("out",))
def encoder_block(x, conv_w, gamma, beta, out=False):
    """x: (N, C_in, H, W) NCHW.  conv_w: (C_out, C_in, 4, 4).  gamma/beta: (C_out,)."""
    c_out = conv_w.shape[0]
    patches, (n, ho, wo) = _im2col_s2_k4_p1_nhwc(x)
    m, k = patches.shape

    # Lane-dense padding; 256-aligned when large enough to fully feed the
    # 2x256^2 MXUs of v6e/v7x (128 is already native for v5e).
    k_p = _round_up(k, 256 if k >= 256 else 128)
    c_out_p = _round_up(c_out, 256 if c_out >= 256 else 128)

    # out=False: materialize bf16 z when a z write+read (4*Cout_p B/row) is cheaper
    # than re-reading patches (2*K_p B/row) + a second full MXU pass.
    materialize_z = bool(out) or (2 * k_p >= 4 * c_out_p)
    z_dtype = jnp.float32 if out else jnp.bfloat16
    z_bytes = 4 if out else 2

    vmem_limit = _vmem_limit_bytes()
    w_spec, w_bufs = _make_weight_spec(k_p, c_out_p)
    weight_bytes = w_bufs * k_p * c_out_p * 2

    # Per-row VMEM of the heaviest phase (inputs/outputs double-buffered).
    per_row_p1 = 2 * (k_p * 2) + (2 * c_out_p * z_bytes if materialize_z else 0)
    if materialize_z:
        per_row_p2 = 2 * c_out_p * z_bytes + 2 * c_out_p * 4
    else:
        per_row_p2 = 2 * (k_p * 2) + 2 * c_out_p * 4
    tile_m = _pick_tile_m(m, max(per_row_p1, per_row_p2), weight_bytes, vmem_limit)
    m_p = _round_up(m, tile_m)
    n_tiles = m_p // tile_m

    # bf16 MXU inputs (f32 accumulation in-kernel), zero-padded.
    patches_p = jnp.pad(patches, ((0, m_p - m), (0, k_p - k)))
    # (C_out, C_in, 4, 4) -> (kh, kw, C_in, C_out) -> (16*C_in, C_out): matches the
    # (kh, kw, C) patch flatten order.
    w_mat = jnp.transpose(conv_w.astype(jnp.float32), (2, 3, 1, 0)).reshape(k, c_out)
    w_p = jnp.pad(w_mat, ((0, k_p - k), (0, c_out_p - c_out))).astype(jnp.bfloat16)
    gamma_p = jnp.pad(gamma.astype(jnp.float32), (0, c_out_p - c_out))
    beta_p = jnp.pad(beta.astype(jnp.float32), (0, c_out_p - c_out))

    cparams = pltpu.CompilerParams(
        dimension_semantics=("parallel",),      # M tiles independent -> megacore on v7x
        vmem_limit_bytes=vmem_limit,
    )

    patch_spec = pl.BlockSpec((tile_m, k_p), lambda i: (i, 0))
    row_f32_spec = pl.BlockSpec((tile_m, c_out_p), lambda i: (i, 0))
    z_spec = pl.BlockSpec((tile_m, c_out_p), lambda i: (i, 0))
    stats_spec = pl.BlockSpec((8, c_out_p), lambda i: (i, 0))
    vec_spec = pl.BlockSpec((1, c_out_p), lambda i: (0, 0))
    stats_shape = jax.ShapeDtypeStruct((n_tiles * 8, c_out_p), jnp.float32)
    z_shape = jax.ShapeDtypeStruct((m_p, c_out_p), z_dtype)
    y_shape = jax.ShapeDtypeStruct((m_p, c_out_p), jnp.float32)

    # ---- Phase 1: matmul (+ optional z materialization) + per-tile BN partials.
    if materialize_z:
        z_p, stats = pl.pallas_call(
            _phase1_z_kernel,
            grid=(n_tiles,),
            in_specs=[patch_spec, w_spec],
            out_specs=[z_spec, stats_spec],
            out_shape=[z_shape, stats_shape],
            compiler_params=cparams,
        )(patches_p, w_p)
    else:
        z_p = None
        stats = pl.pallas_call(
            _phase1_stats_kernel,
            grid=(n_tiles,),
            in_specs=[patch_spec, w_spec],
            out_specs=stats_spec,
            out_shape=stats_shape,
            compiler_params=cparams,
        )(patches_p, w_p)

    # ---- Tiny JAX glue: combine partials, fold BN into one scale/shift per channel.
    stats = stats.reshape(n_tiles, 8, c_out_p)
    ch_sum = jnp.sum(stats[:, 0, :], axis=0)
    ch_sumsq = jnp.sum(stats[:, 1, :], axis=0)
    inv_m = jnp.float32(1.0 / m)                 # divide by TRUE M (pad rows are zero)
    mean = ch_sum * inv_m
    var = jnp.maximum(ch_sumsq * inv_m - mean * mean, 0.0)
    inv_std = jax.lax.rsqrt(var + _EPS)
    scale = (gamma_p * inv_std).reshape(1, c_out_p)
    shift = (beta_p - mean * gamma_p * inv_std).reshape(1, c_out_p)

    # ---- Phase 2: fused scale/shift + LeakyReLU(0.2).
    if materialize_z:
        y_p = pl.pallas_call(
            _phase2_from_z_kernel,
            grid=(n_tiles,),
            in_specs=[z_spec, vec_spec, vec_spec],
            out_specs=row_f32_spec,
            out_shape=y_shape,
            compiler_params=cparams,
        )(z_p, scale, shift)
    else:
        y_p = pl.pallas_call(
            _phase2_recompute_kernel,
            grid=(n_tiles,),
            in_specs=[patch_spec, w_spec, vec_spec, vec_spec],
            out_specs=row_f32_spec,
            out_shape=y_shape,
            compiler_params=cparams,
        )(patches_p, w_p, scale, shift)

    # TODO(synk): if the consumer accepts NHWC, return the (n, ho, wo, c_out) view
    # directly and skip this full-tensor NCHW transpose copy (and the one for mid).
    y = y_p[:m, :c_out].reshape(n, ho, wo, c_out).transpose(0, 3, 1, 2)
    if out:
        mid = z_p[:m, :c_out].astype(jnp.float32)
        mid = mid.reshape(n, ho, wo, c_out).transpose(0, 3, 1, 2)
        return y, mid
    return y


# ---------------------------------- test --------------------------------------


def _reference(x, conv_w, gamma, beta):
    z = jax.lax.conv_general_dilated(
        x, conv_w, window_strides=(2, 2), padding=((1, 1), (1, 1)),
        dimension_numbers=("NCHW", "OIHW", "NCHW"))
    mu = jnp.mean(z, axis=(0, 2, 3), keepdims=True)
    vr = jnp.mean((z - mu) ** 2, axis=(0, 2, 3), keepdims=True)
    zh = (z - mu) * jax.lax.rsqrt(vr + _EPS)
    zh = zh * gamma.reshape(1, -1, 1, 1) + beta.reshape(1, -1, 1, 1)
    return jnp.where(zh >= 0, zh, _NEG_SLOPE * zh), z


if __name__ == "__main__":
    key = jax.random.PRNGKey(0)

    # Config 1 exercises the out=False recompute path (small K_p); config 2
    # exercises the bf16-z materialization path (K_p >= 2*Cout_p).
    for (N, C_IN, C_OUT, H, W) in [(2, 4, 8, 16, 16), (2, 16, 8, 8, 8)]:
        k_x, k_w, key = jax.random.split(key, 3)
        x = jax.random.normal(k_x, (N, C_IN, H, W), dtype=jnp.float32)

        fan_in = C_IN * 16  # PyTorch BN defaults: gamma=1, beta=0.
        conv_w = jax.random.normal(k_w, (C_OUT, C_IN, 4, 4),
                                   dtype=jnp.float32) / jnp.sqrt(fan_in)
        gamma = jnp.ones((C_OUT,), dtype=jnp.float32)
        beta = jnp.zeros((C_OUT,), dtype=jnp.float32)

        y = encoder_block(x, conv_w, gamma, beta, out=False)
        y2, mid = encoder_block(x, conv_w, gamma, beta, out=True)
        jax.block_until_ready((y, y2, mid))

        assert y.shape == (N, C_OUT, H // 2, W // 2)
        assert mid.shape == (N, C_OUT, H // 2, W // 2)

        # Pure-JAX f32 reference (loose tolerance: kernel uses bf16 MXU inputs).
        y_ref, z_ref = _reference(x, conv_w, gamma, beta)
        err_y = float(jnp.max(jnp.abs(y - y_ref)))
        err_y2 = float(jnp.max(jnp.abs(y2 - y_ref)))
        err_mid = float(jnp.max(jnp.abs(mid - z_ref)))
        assert err_y < 0.1 and err_y2 < 0.1 and err_mid < 0.1, (err_y, err_y2, err_mid)

    print("KERNEL_OK")
</pallas_src>

<mosaic_0001>
module attributes {stable_mosaic.version = 11 : i64} {
  func.func @_phase1_stats_kernel(%arg0: i32, %arg1: memref<64x128xbf16, #tpu.memory_space<vmem>>, %arg2: memref<128x128xbf16, #tpu.memory_space<vmem>>, %arg3: memref<8x128xf32, #tpu.memory_space<vmem>>) attributes {dimension_semantics = [#tpu.dimension_semantics<parallel>], iteration_bounds = array<i64: 2>, scalar_prefetch = 0 : i64, scratch_operands = 0 : i64, tpu.core_type = #tpu.core_type<tc>, window_params = [{transform_indices = @transform_0, window_bounds = array<i64: 64, 128>}, {pipeline_mode = #tpu.pipeline_mode<synchronous>, transform_indices = @transform_1, window_bounds = array<i64: 128, 128>}, {transform_indices = @transform_2, window_bounds = array<i64: 8, 128>}]} {
    %c0 = arith.constant 0 : index
    %c0_0 = arith.constant 0 : index
    %0 = vector.load %arg1[%c0, %c0_0] : memref<64x128xbf16, #tpu.memory_space<vmem>>, vector<64x128xbf16>
    %c0_1 = arith.constant 0 : index
    %c0_2 = arith.constant 0 : index
    %1 = vector.load %arg2[%c0_1, %c0_2] : memref<128x128xbf16, #tpu.memory_space<vmem>>, vector<128x128xbf16>
    %cst = arith.constant dense<0.000000e+00> : vector<64x128xf32>
    %2 = tpu.matmul %0, %1, %cst {dimension_numbers = #tpu.dot_dimension_numbers<[1], [0], [0], [1], [0, 0, 1, 1], [], []>} : vector<64x128xbf16>, vector<128x128xbf16>, vector<64x128xf32> -> vector<64x128xf32>
    %cst_3 = arith.constant dense<0.000000e+00> : vector<128xf32>
    %3 = vector.multi_reduction <add>, %2, %cst_3 [0] : vector<64x128xf32> to vector<128xf32>
    %4 = vector.shape_cast %3 : vector<128xf32> to vector<1x128xf32>
    %5 = arith.mulf %2, %2 : vector<64x128xf32>
    %cst_4 = arith.constant dense<0.000000e+00> : vector<128xf32>
    %6 = vector.multi_reduction <add>, %5, %cst_4 [0] : vector<64x128xf32> to vector<128xf32>
    %7 = vector.shape_cast %6 : vector<128xf32> to vector<1x128xf32>
    %8 = tpu.iota {dimensions = array<i32: 0>} : vector<8x128xi32>
    %c0_i32 = arith.constant 0 : i32
    %9 = vector.broadcast %c0_i32 : i32 to vector<8x128xi32>
    %10 = arith.cmpi eq, %8, %9 : vector<8x128xi32>
    %c1_i32 = arith.constant 1 : i32
    %11 = vector.broadcast %c1_i32 : i32 to vector<8x128xi32>
    %12 = arith.cmpi eq, %8, %11 : vector<8x128xi32>
    %cst_5 = arith.constant 0.000000e+00 : f32
    %13 = vector.shape_cast %7 : vector<1x128xf32> to vector<1x128xf32>
    %14 = vector.broadcast %13 : vector<1x128xf32> to vector<8x128xf32>
    %15 = vector.broadcast %cst_5 : f32 to vector<8x128xf32>
    %16 = arith.select %12, %14, %15 : vector<8x128xi1>, vector<8x128xf32>
    %17 = vector.shape_cast %4 : vector<1x128xf32> to vector<1x128xf32>
    %18 = vector.broadcast %17 : vector<1x128xf32> to vector<8x128xf32>
    %19 = arith.select %10, %18, %16 : vector<8x128xi1>, vector<8x128xf32>
    %c0_6 = arith.constant 0 : index
    %c0_7 = arith.constant 0 : index
    %20 = vector.load %arg3[%c0_6, %c0_7] : memref<8x128xf32, #tpu.memory_space<vmem>>, vector<8x128xf32>
    tpu.vector_store %arg3[%c0_6, %c0_7], %19 {strides = array<i32>} : memref<8x128xf32, #tpu.memory_space<vmem>>, vector<8x128xf32>,
    return
  }
  func.func @transform_0(%arg0: i32) -> (i32, i32) {
    %c0_i32 = arith.constant 0 : i32
    %c0_i32_0 = arith.constant 0 : i32
    return %arg0, %c0_i32 : i32, i32
  }
  func.func @transform_1(%arg0: i32) -> (i32, i32) {
    %c0_i32 = arith.constant 0 : i32
    %c0_i32_0 = arith.constant 0 : i32
    %c0_i32_1 = arith.constant 0 : i32
    return %c0_i32, %c0_i32_0 : i32, i32
  }
  func.func @transform_2(%arg0: i32) -> (i32, i32) {
    %c0_i32 = arith.constant 0 : i32
    %c0_i32_0 = arith.constant 0 : i32
    return %arg0, %c0_i32 : i32, i32
  }
}

module attributes {stable_mosaic.version = 11 : i64} {
  func.func @_phase2_recompute_kernel(%arg0: i32, %arg1: memref<64x128xbf16, #tpu.memory_space<vmem>>, %arg2: memref<128x128xbf16, #tpu.memory_space<vmem>>, %arg3: memref<1x128xf32, #tpu.memory_space<vmem>>, %arg4: memref<1x128xf32, #tpu.memory_space<vmem>>, %arg5: memref<64x128xf32, #tpu.memory_space<vmem>>) attributes {dimension_semantics = [#tpu.dimension_semantics<parallel>], iteration_bounds = array<i64: 2>, scalar_prefetch = 0 : i64, scratch_operands = 0 : i64, tpu.core_type = #tpu.core_type<tc>, window_params = [{transform_indices = @transform_0, window_bounds = array<i64: 64, 128>}, {pipeline_mode = #tpu.pipeline_mode<synchronous>, transform_indices = @transform_1, window_bounds = array<i64: 128, 128>}, {pipeline_mode = #tpu.pipeline_mode<synchronous>, transform_indices = @transform_2, window_bounds = array<i64: 1, 128>}, {pipeline_mode = #tpu.pipeline_mode<synchronous>, transform_indices = @transform_3, window_bounds = array<i64: 1, 128>}, {transform_indices = @transform_4, window_bounds = array<i64: 64, 128>}]} {
    %c0 = arith.constant 0 : index
    %c0_0 = arith.constant 0 : index
    %0 = vector.load %arg1[%c0, %c0_0] : memref<64x128xbf16, #tpu.memory_space<vmem>>, vector<64x128xbf16>
    %c0_1 = arith.constant 0 : index
    %c0_2 = arith.constant 0 : index
    %1 = vector.load %arg2[%c0_1, %c0_2] : memref<128x128xbf16, #tpu.memory_space<vmem>>, vector<128x128xbf16>
    %cst = arith.constant dense<0.000000e+00> : vector<64x128xf32>
    %2 = tpu.matmul %0, %1, %cst {dimension_numbers = #tpu.dot_dimension_numbers<[1], [0], [0], [1], [0, 0, 1, 1], [], []>} : vector<64x128xbf16>, vector<128x128xbf16>, vector<64x128xf32> -> vector<64x128xf32>
    %c0_3 = arith.constant 0 : index
    %c0_4 = arith.constant 0 : index
    %3 = vector.load %arg3[%c0_3, %c0_4] : memref<1x128xf32, #tpu.memory_space<vmem>>, vector<1x128xf32>
    %4 = vector.broadcast %3 : vector<1x128xf32> to vector<64x128xf32>
    %5 = arith.mulf %2, %4 : vector<64x128xf32>
    %c0_5 = arith.constant 0 : index
    %c0_6 = arith.constant 0 : index
    %6 = vector.load %arg4[%c0_5, %c0_6] : memref<1x128xf32, #tpu.memory_space<vmem>>, vector<1x128xf32>
    %7 = vector.broadcast %6 : vector<1x128xf32> to vector<64x128xf32>
    %8 = arith.addf %5, %7 : vector<64x128xf32>
    %cst_7 = arith.constant 0.000000e+00 : f32
    %9 = vector.broadcast %cst_7 : f32 to vector<64x128xf32>
    %10 = arith.cmpf oge, %8, %9 : vector<64x128xf32>
    %cst_8 = arith.constant 2.000000e-01 : f32
    %11 = vector.broadcast %cst_8 : f32 to vector<64x128xf32>
    %12 = arith.mulf %11, %8 : vector<64x128xf32>
    %13 = arith.select %10, %8, %12 : vector<64x128xi1>, vector<64x128xf32>
    %c0_9 = arith.constant 0 : index
    %c0_10 = arith.constant 0 : index
    %14 = vector.load %arg5[%c0_9, %c0_10] : memref<64x128xf32, #tpu.memory_space<vmem>>, vector<64x128xf32>
    tpu.vector_store %arg5[%c0_9, %c0_10], %13 {strides = array<i32>} : memref<64x128xf32, #tpu.memory_space<vmem>>, vector<64x128xf32>,
    return
  }
  func.func @transform_0(%arg0: i32) -> (i32, i32) {
    %c0_i32 = arith.constant 0 : i32
    %c0_i32_0 = arith.constant 0 : i32
    return %arg0, %c0_i32 : i32, i32
  }
  func.func @transform_1(%arg0: i32) -> (i32, i32) {
    %c0_i32 = arith.constant 0 : i32
    %c0_i32_0 = arith.constant 0 : i32
    %c0_i32_1 = arith.constant 0 : i32
    return %c0_i32, %c0_i32_0 : i32, i32
  }
  func.func @transform_2(%arg0: i32) -> (i32, i32) {
    %c0_i32 = arith.constant 0 : i32
    %c0_i32_0 = arith.constant 0 : i32
    %c0_i32_1 = arith.constant 0 : i32
    return %c0_i32, %c0_i32_0 : i32, i32
  }
  func.func @transform_3(%arg0: i32) -> (i32, i32) {
    %c0_i32 = arith.constant 0 : i32
    %c0_i32_0 = arith.constant 0 : i32
    %c0_i32_1 = arith.constant 0 : i32
    return %c0_i32, %c0_i32_0 : i32, i32
  }
  func.func @transform_4(%arg0: i32) -> (i32, i32) {
    %c0_i32 = arith.constant 0 : i32
    %c0_i32_0 = arith.constant 0 : i32
    return %arg0, %c0_i32 : i32, i32
  }
}

</mosaic_0001>

<bundles_post_ra>
// kernel: encoder_block.3
= control target key start
LH: loop header
LB: loop body
LE: loop exit
PB: predicated region body
PF: predicated region fallthrough
CT: control target
= control target key end

     0   :  { %s611_s15 = smov 0   ;;  %s678_s0 = inlined_call_operand.vmem [shape: bf16[128,128], index: 0, kind: input, shape index: {}]   ;;  %s679_s1 = inlined_call_operand.vmem [shape: bf16[128,128], index: 1, kind: input, shape index: {}]   ;;  %s680_s2 = inlined_call_operand.vmem [shape: f32[1,128], index: 2, kind: input, shape index: {}]   ;;  %s681_s3 = inlined_call_operand.vmem [shape: f32[1,128], index: 3, kind: input, shape index: {}]   ;;  %s682_s4 = inlined_call_operand.vmem [shape: f32[128,128], index: 4, kind: output, shape index: {}]  }
   0x1 LB: > { %s481_s16 = sadd.s32 4294967295, %s584_s15   ;;  %p485_p0 = scmp.ge.s32.totalorder %s584_s15, 1  ;;  %s584_s15 = sphi %s611_s15, %s14_s15  }
   0x2   : > { %p163_p1 = scmp.lt.s32.totalorder %s584_s15, 3 }
   0x4   : > { %p164_p2 = pnand %p485_p0, %p163_p1 }
   0x5   : > { %v566_v0 = vld [vmem:[%s679_s1] sm:$0xff] (!%p164_p2)   ;;  %s486_s19 = sshll.u32 (!%p164_p2), %s481_s16, 3  ;;  %v567_v1 = vld [vmem:[%s679_s1 + $0x8] sm:$0xff] (!%p164_p2)   ;;  %v568_v2 = vld [vmem:[%s679_s1 + $0x10] sm:$0xff] (!%p164_p2)  }
   0x6   : > { %167 = sbr.rel (%p164_p2) target bundleno = 264 (0x108), region = 36  ;;  %p190_p3 = scmp.lt.s32.totalorder (!%p164_p2), %s486_s19, 15  ;;  %518 = vmatprep.subr.bf16.mxu0 (!%p164_p2), %v566_v0  ;;  %542 = vmatprep.subr.bf16.mxu1 (!%p164_p2), %v566_v0  ;;  %v569_v3 = vld [vmem:[%s679_s1 + $0x18] sm:$0xff] (!%p164_p2)   ;;  %v570_v6 = vld [vmem:[%s679_s1 + $0x20] sm:$0xff] (!%p164_p2)   ;;  %v571_v7 = vld [vmem:[%s679_s1 + $0x28] sm:$0xff] (!%p164_p2)  }
   0x7   : > { %519 = vmatpush3.bf16.msra.mxu0 (!%p164_p2), %v566_v0  ;;  %550 = vmatpush3.bf16.msra.mxu1 (!%p164_p2), %v566_v0  ;;  %v572_v8 = vld [vmem:[%s679_s1 + $0x30] sm:$0xff] (!%p164_p2)   ;;  %v573_v9 = vld [vmem:[%s679_s1 + $0x38] sm:$0xff] (!%p164_p2)   ;;  %v502_v12 = vld [vmem:[%s680_s2] ss:$0 sm:$0xff] (!%p164_p2) }
   0x8   : > { %520 = vmatprep.subr.bf16.mxu0 (!%p164_p2), %v567_v1  ;;  %543 = vmatprep.subr.bf16.mxu1 (!%p164_p2), %v567_v1  ;;  %v503_v14 = vld [vmem:[%s681_s3] ss:$0 sm:$0xff] (!%p164_p2) }
   0xb   : > { %521 = vmatpush3.bf16.msra.mxu0 (!%p164_p2), %v567_v1  ;;  %551 = vmatpush3.bf16.msra.mxu1 (!%p164_p2), %v567_v1 }
   0xc   : > { %522 = vmatprep.subr.bf16.mxu0 (!%p164_p2), %v568_v2  ;;  %544 = vmatprep.subr.bf16.mxu1 (!%p164_p2), %v568_v2 }
   0xd   : > { %s684_s19 = smov (!%p190_p3, %s486_s19), 15 }
   0xe   : > { %s487_s24 = sshll.u32 %s684_s19, 2  ;;  %s489_s17 = sshll.u32 %s684_s19, 3 }
   0xf   : > { %s634_s27 = scalar_lea.vmem %s678_s0, %s487_s24  ;;  %523 = vmatpush3.bf16.msra.mxu0 %v568_v2  ;;  %552 = vmatpush3.bf16.msra.mxu1 %v568_v2  ;;  %s665_s21 = scalar_lea.vmem %s682_s4, %s489_s17 }
  0x10   : > { %v574_v4 = vld [vmem:[%s634_s27] sm:$0xff]   ;;  %v575_v5 = vld [vmem:[%s634_s27 + $0x10] sm:$0xff]   ;;  %524 = vmatprep.subr.bf16.mxu0 %v569_v3  ;;  %545 = vmatprep.subr.bf16.mxu1 %v569_v3  ;;  %v576_v10 = vld [vmem:[%s634_s27 + $0x8] sm:$0xff]  }
  0x11   : > { %534 = vmatprep.mubr.bf16.mxu0 %v574_v4  ;;  %538 = vmatprep.mubr.bf16.mxu1 %v575_v5  ;;  %v577_v11 = vld [vmem:[%s634_s27 + $0x18] sm:$0xff]  }
  0x13   : > { %525 = vmatpush3.bf16.msra.mxu0 %v569_v3  ;;  %553 = vmatpush3.bf16.msra.mxu1 %v569_v3 }
  0x14   : > { %526 = vmatprep.subr.bf16.mxu0 %v570_v6  ;;  %546 = vmatprep.subr.bf16.mxu1 %v570_v6 }
  0x17   : > { %527 = vmatpush3.bf16.msra.mxu0 %v570_v6  ;;  %554 = vmatpush3.bf16.msra.mxu1 %v570_v6 }
  0x18   : > { %528 = vmatprep.subr.bf16.mxu0 %v571_v7  ;;  %547 = vmatprep.subr.bf16.mxu1 %v571_v7 }
  0x1b   : > { %529 = vmatpush3.bf16.msra.mxu0 %v571_v7  ;;  %555 = vmatpush3.bf16.msra.mxu1 %v571_v7 }
  0x1c   : > { %530 = vmatprep.subr.bf16.mxu0 %v572_v8  ;;  %548 = vmatprep.subr.bf16.mxu1 %v572_v8 }
  0x1f   : > { %531 = vmatpush3.bf16.msra.mxu0 %v572_v8  ;;  %556 = vmatpush3.bf16.msra.mxu1 %v572_v8 }
  0x20   : > { %532 = vmatprep.subr.bf16.mxu0 %v573_v9  ;;  %549 = vmatprep.subr.bf16.mxu1 %v573_v9 }
  0x23   : > { %533 = vmatpush3.bf16.msra.mxu0 %v573_v9  ;;  %557 = vmatpush3.bf16.msra.mxu1 %v573_v9 }
  0x26   : > { %535 = vmatmul.mubr.bf16.vlgmr.msra.gmra.mrb[0].mxu0 %v576_v10  ;;  %539 = vmatmul.mubr.bf16.vlgmr.msra.gmra.mrb[0].mxu1 %v577_v11 }
  0xf9   : > { %v536_v13 = vpop.f32.mrb[0].mxu0  ;;  %v540_v15 = vpop.f32.mrb[0].mxu1 }
  0xfa   : > { %v372_v16 = vmul.f32 %v536_v13, %v502_v12  ;;  %v376_v17 = vmul.f32 %v540_v15, %v502_v12  ;;  %v332_v18 = vpop.f32.mrb[1].mxu0  ;;  %v348_v19 = vpop.f32.mrb[1].mxu1 }
  0xfb   : > { %v370_v20 = vmul.f32 %v502_v12, %v332_v18  ;;  %v374_v21 = vmul.f32 %v502_v12, %v348_v19  ;;  %v537_v22 = vpop.f32.mrb[2].mxu0  ;;  %v541_v23 = vpop.f32.mrb[2].mxu1 }
  0xfc   : > { %v387_v24 = vadd.f32 %v503_v14, %v372_v16  ;;  %v391_v25 = vadd.f32 %v503_v14, %v376_v17  ;;  %v373_v26 = vmul.f32 %v537_v22, %v502_v12  ;;  %v377_v27 = vmul.f32 %v541_v23, %v502_v12  ;;  %v335_v28 = vpop.f32.mrb[3].mxu0  ;;  %v351_v29 = vpop.f32.mrb[3].mxu1 }
  0xfd   : > { %v385_v30 = vadd.f32 %v503_v14, %v370_v20  ;;  %v389_v31 = vadd.f32 %v503_v14, %v374_v21  ;;  %v371_v32 = vmul.f32 %v502_v12, %v335_v28  ;;  %v375_v33 = vmul.f32 %v502_v12, %v351_v29 }
  0xfe   : > { %vm395_vm0 = vcmp.ge.f32.partialorder %v387_v24, 0.0  ;;  %v403_v34 = vmul.f32 0.2, %v387_v24  ;;  %vm399_vm1 = vcmp.ge.f32.partialorder %v391_v25, 0.0  ;;  %v407_v35 = vmul.f32 0.2, %v391_v25 }
  0xff   : > { %vm393_vm2 = vcmp.ge.f32.partialorder %v385_v30, 0.0  ;;  %v401_v36 = vmul.f32 0.2, %v385_v30  ;;  %vm397_vm3 = vcmp.ge.f32.partialorder %v389_v31, 0.0  ;;  %v405_v37 = vmul.f32 0.2, %v389_v31 }
 0x100   : > { %v411_v38 = vsel %vm395_vm0, %v387_v24, %v403_v34  ;;  %v415_v39 = vsel %vm399_vm1, %v391_v25, %v407_v35  ;;  %v388_v40 = vadd.f32 %v503_v14, %v373_v26  ;;  %v392_v41 = vadd.f32 %v503_v14, %v377_v27 }
 0x101   : > { %419 = vst [vmem:[%s665_s21 + $0x10] sm:$0xff] %v411_v38  ;;  %423 = vst [vmem:[%s665_s21 + $0x30] sm:$0xff] %v415_v39  ;;  %v409_v42 = vsel %vm393_vm2, %v385_v30, %v401_v36  ;;  %v413_v43 = vsel %vm397_vm3, %v389_v31, %v405_v37  ;;  %v386_v44 = vadd.f32 %v503_v14, %v371_v32 }
 0x102   : > { %v390_v45 = vadd.f32 %v503_v14, %v375_v33  ;;  %417 = vst [vmem:[%s665_s21] sm:$0xff] %v409_v42  ;;  %421 = vst [vmem:[%s665_s21 + $0x20] sm:$0xff] %v413_v43  ;;  %vm396_vm4 = vcmp.ge.f32.partialorder %v388_v40, 0.0  ;;  %v404_v46 = vmul.f32 0.2, %v388_v40  ;;  %vm400_vm5 = vcmp.ge.f32.partialorder %v392_v41, 0.0 }
 0x103   : > { %v408_v47 = vmul.f32 0.2, %v392_v41  ;;  %vm394_vm6 = vcmp.ge.f32.partialorder %v386_v44, 0.0  ;;  %v402_v48 = vmul.f32 0.2, %v386_v44 }
 0x104   : > { %vm398_vm7 = vcmp.ge.f32.partialorder %v390_v45, 0.0  ;;  %v406_v49 = vmul.f32 0.2, %v390_v45  ;;  %v412_v50 = vsel %vm396_vm4, %v388_v40, %v404_v46 }
 0x105   : > { %v416_v51 = vsel %vm400_vm5, %v392_v41, %v408_v47  ;;  %420 = vst [vmem:[%s665_s21 + $0x18] sm:$0xff] %v412_v50  ;;  %v410_v52 = vsel %vm394_vm6, %v386_v44, %v402_v48 }
 0x106   : > { %424 = vst [vmem:[%s665_s21 + $0x38] sm:$0xff] %v416_v51  ;;  %v414_v53 = vsel %vm398_vm7, %v390_v45, %v406_v49  ;;  %418 = vst [vmem:[%s665_s21 + $0x8] sm:$0xff] %v410_v52 }
 0x107   : > { %422 = vst [vmem:[%s665_s21 + $0x28] sm:$0xff] %v414_v53 }
 0x108 PF: > { %s14_s15 = sadd.s32 1, %s584_s15  }
 0x109   : > { %p11_p4 = scmp.ge.s32.totalorder %s14_s15, 4  }
 0x10b   :  { %13 = sbr.rel (!%p11_p4) target bundleno = 1 (0x1), region = 66 }

// kernel: encoder_block.2
= control target key start
LH: loop header
LB: loop body
LE: loop exit
PB: predicated region body
PF: predicated region fallthrough
CT: control target
= control target key end

     0   :  { %s517_s9 = smov 0   ;;  %s569_s0 = inlined_call_operand.vmem [shape: bf16[128,128], index: 0, kind: input, shape index: {}]   ;;  %s570_s1 = inlined_call_operand.vmem [shape: bf16[128,128], index: 1, kind: input, shape index: {}]   ;;  %s571_s2 = inlined_call_operand.vmem [shape: f32[16,128], index: 2, kind: output, shape index: {}]  }
   0x1 LB: > { %s523_s10 = sadd.s32 4294967295, %s500_s9   ;;  %p404_p0 = scmp.ge.s32.totalorder %s500_s9, 1  ;;  %s500_s9 = sphi %s517_s9, %s12_s9  }
   0x2   : > { %p113_p1 = scmp.lt.s32.totalorder %s500_s9, 3 }
   0x4   : > { %p114_p2 = pnand %p404_p0, %p113_p1 }
   0x5   : > { %v482_v0 = vld [vmem:[%s570_s1] sm:$0xff] (!%p114_p2)   ;;  %s405_s13 = sshll.u32 (!%p114_p2), %s523_s10, 3  ;;  %v483_v1 = vld [vmem:[%s570_s1 + $0x8] sm:$0xff] (!%p114_p2)   ;;  %v484_v2 = vld [vmem:[%s570_s1 + $0x10] sm:$0xff] (!%p114_p2)   ;;  %p140_p4 = scmp.lt.s32.totalorder (!%p114_p2), %s523_s10, 1  ;;  %v340_v45 = vlaneseq (!%p114_p2) }
   0x6   : > { %117 = sbr.rel (%p114_p2) target bundleno = 284 (0x11c), region = 28  ;;  %p135_p3 = scmp.lt.s32.totalorder (!%p114_p2), %s405_s13, 15  ;;  %434 = vmatprep.subr.bf16.mxu0 (!%p114_p2), %v482_v0  ;;  %458 = vmatprep.subr.bf16.mxu1 (!%p114_p2), %v482_v0  ;;  %v485_v3 = vld [vmem:[%s570_s1 + $0x18] sm:$0xff] (!%p114_p2)   ;;  %v486_v6 = vld [vmem:[%s570_s1 + $0x20] sm:$0xff] (!%p114_p2)   ;;  %v487_v7 = vld [vmem:[%s570_s1 + $0x28] sm:$0xff] (!%p114_p2)  }
   0x7   : > { %435 = vmatpush3.bf16.msra.mxu0 (!%p114_p2), %v482_v0  ;;  %466 = vmatpush3.bf16.msra.mxu1 (!%p114_p2), %v482_v0  ;;  %v488_v8 = vld [vmem:[%s570_s1 + $0x30] sm:$0xff] (!%p114_p2)   ;;  %v489_v9 = vld [vmem:[%s570_s1 + $0x38] sm:$0xff] (!%p114_p2)   ;;  %v341_v50 = vshrl.u32 (!%p114_p2), %v340_v45, 7 }
   0x8   : > { %436 = vmatprep.subr.bf16.mxu0 (!%p114_p2), %v483_v1  ;;  %459 = vmatprep.subr.bf16.mxu1 (!%p114_p2), %v483_v1 }
   0x9   : > { %vm343_vm0 = vcmp.eq.s32.totalorder (!%p114_p2), %v341_v50, 1  ;;  %vm342_vm1 = vcmp.eq.s32.totalorder (!%p114_p2), %v341_v50, 0 }
   0xb   : > { %437 = vmatpush3.bf16.msra.mxu0 (!%p114_p2), %v483_v1  ;;  %467 = vmatpush3.bf16.msra.mxu1 (!%p114_p2), %v483_v1 }
   0xc   : > { %438 = vmatprep.subr.bf16.mxu0 (!%p114_p2), %v484_v2  ;;  %460 = vmatprep.subr.bf16.mxu1 (!%p114_p2), %v484_v2 }
   0xd   : > { %s573_s13 = smov (!%p135_p3, %s405_s13), 15  ;;  %s575_s10 = smov (!%p140_p4, %s523_s10), 1 }
   0xe   : > { %s406_s18 = sshll.u32 %s573_s13, 2  ;;  %s407_s4 = sshll.u32 %s575_s10, 3 }
   0xf   : > { %s540_s21 = scalar_lea.vmem %s569_s0, %s406_s18  ;;  %439 = vmatpush3.bf16.msra.mxu0 %v484_v2  ;;  %468 = vmatpush3.bf16.msra.mxu1 %v484_v2  ;;  %s143_s7 = scalar_lea.vmem %s571_s2, %s407_s4 }
  0x10   : > { %v490_v4 = vld [vmem:[%s540_s21] sm:$0xff]   ;;  %v492_v5 = vld [vmem:[%s540_s21 + $0x10] sm:$0xff]   ;;  %440 = vmatprep.subr.bf16.mxu0 %v485_v3  ;;  %461 = vmatprep.subr.bf16.mxu1 %v485_v3  ;;  %v491_v10 = vld [vmem:[%s540_s21 + $0x8] sm:$0xff]  }
  0x11   : > { %450 = vmatprep.mubr.bf16.mxu0 %v490_v4  ;;  %454 = vmatprep.mubr.bf16.mxu1 %v492_v5  ;;  %v493_v11 = vld [vmem:[%s540_s21 + $0x18] sm:$0xff]  }
  0x13   : > { %441 = vmatpush3.bf16.msra.mxu0 %v485_v3  ;;  %469 = vmatpush3.bf16.msra.mxu1 %v485_v3 }
  0x14   : > { %442 = vmatprep.subr.bf16.mxu0 %v486_v6  ;;  %462 = vmatprep.subr.bf16.mxu1 %v486_v6 }
  0x17   : > { %443 = vmatpush3.bf16.msra.mxu0 %v486_v6  ;;  %470 = vmatpush3.bf16.msra.mxu1 %v486_v6 }
  0x18   : > { %444 = vmatprep.subr.bf16.mxu0 %v487_v7  ;;  %463 = vmatprep.subr.bf16.mxu1 %v487_v7 }
  0x1b   : > { %445 = vmatpush3.bf16.msra.mxu0 %v487_v7  ;;  %471 = vmatpush3.bf16.msra.mxu1 %v487_v7 }
  0x1c   : > { %446 = vmatprep.subr.bf16.mxu0 %v488_v8  ;;  %464 = vmatprep.subr.bf16.mxu1 %v488_v8 }
  0x1f   : > { %447 = vmatpush3.bf16.msra.mxu0 %v488_v8  ;;  %472 = vmatpush3.bf16.msra.mxu1 %v488_v8 }
  0x20   : > { %448 = vmatprep.subr.bf16.mxu0 %v489_v9  ;;  %465 = vmatprep.subr.bf16.mxu1 %v489_v9 }
  0x23   : > { %449 = vmatpush3.bf16.msra.mxu0 %v489_v9  ;;  %473 = vmatpush3.bf16.msra.mxu1 %v489_v9 }
  0x26   : > { %451 = vmatmul.mubr.bf16.vlgmr.msra.gmra.mrb[0].mxu0 %v491_v10  ;;  %455 = vmatmul.mubr.bf16.vlgmr.msra.gmra.mrb[0].mxu1 %v493_v11 }
  0xf9   : > { %v452_v12 = vpop.f32.mrb[0].mxu0  ;;  %v456_v13 = vpop.f32.mrb[0].mxu1 }
  0xfa   : > { %v275_v14 = vpop.f32.mrb[1].mxu0  ;;  %v291_v15 = vpop.f32.mrb[1].mxu1  ;;  %v321_v23 = vmul.f32 %v452_v12, %v452_v12  ;;  %v325_v35 = vmul.f32 %v456_v13, %v456_v13 }
  0xfb   : > { %v453_v16 = vpop.f32.mrb[2].mxu0  ;;  %v457_v17 = vpop.f32.mrb[2].mxu1  ;;  %v319_v20 = vmul.f32 %v275_v14, %v275_v14  ;;  %v323_v29 = vmul.f32 %v291_v15, %v291_v15 }
  0xfc   : > { %v278_v18 = vpop.f32.mrb[3].mxu0  ;;  %v294_v19 = vpop.f32.mrb[3].mxu1  ;;  %v322_v26 = vmul.f32 %v453_v16, %v453_v16  ;;  %v326_v38 = vmul.f32 %v457_v17, %v457_v17 }
  0xfd   : > { %v306_v21 = vadd.f32 %v278_v18, %v275_v14  ;;  %v320_v22 = vmul.f32 %v278_v18, %v278_v18  ;;  %v324_v34 = vmul.f32 %v294_v19, %v294_v19 }
  0xff   : > { %v307_v24 = vadd.f32 %v452_v12, %v306_v21  ;;  %v327_v25 = vadd.f32 %v320_v22, %v319_v20 }
 0x101   : > { %v328_v27 = vadd.f32 %v327_v25, %v321_v23  ;;  %v308_v28 = vadd.f32 %v453_v16, %v307_v24 }
 0x103   : > { %v309_v30 = vadd.f32 %v308_v28, %v291_v15  ;;  %v329_v31 = vadd.f32 %v328_v27, %v322_v26 }
 0x105   : > { %v330_v32 = vadd.f32 %v329_v31, %v323_v29  ;;  %v310_v33 = vadd.f32 %v309_v30, %v294_v19 }
 0x107   : > { %v311_v36 = vadd.f32 %v456_v13, %v310_v33  ;;  %v331_v37 = vadd.f32 %v330_v32, %v324_v34 }
 0x109   : > { %v312_v39 = vadd.f32 %v457_v17, %v311_v36  ;;  %v332_v40 = vadd.f32 %v331_v37, %v325_v35 }
 0x10b   : > { %v313_v41 = vrot.slane %v312_v39, 4  ;;  %v333_v42 = vadd.f32 %v332_v40, %v326_v38 }
 0x10d   : > { %v314_v43 = vadd.f32 %v313_v41, %v312_v39  ;;  %v334_v44 = vrot.slane %v333_v42, 4 }
 0x10f   : > { %v315_v46 = vrot.slane %v314_v43, 2  ;;  %v335_v47 = vadd.f32 %v334_v44, %v333_v42 }
 0x111   : > { %v316_v48 = vadd.f32 %v315_v46, %v314_v43  ;;  %v336_v49 = vrot.slane %v335_v47, 2 }
 0x113   : > { %v337_v51 = vadd.f32 %v336_v49, %v335_v47  ;;  %v317_v52 = vrot.slane %v316_v48, 1 }
 0x115   : > { %v338_v53 = vrot.slane %v337_v51, 1  ;;  %v318_v55 = vadd.f32 %v317_v52, %v316_v48 }
 0x117   : > { %v339_v54 = vadd.f32 %v338_v53, %v337_v51 }
 0x119   : > { %v344_v56 = vsel %vm343_vm0, %v339_v54, 0.0 }
 0x11a   : > { %v345_v57 = vsel %vm342_vm1, %v318_v55, %v344_v56 }
 0x11b   : > { %346 = vst [vmem:[%s143_s7] sm:$0xff] %v345_v57 }
 0x11c PF: > { %s12_s9 = sadd.s32 1, %s500_s9  }
 0x11d   : > { %p9_p5 = scmp.ge.s32.totalorder %s12_s9, 4  }
 0x11f   :  { %11 = sbr.rel (!%p9_p5) target bundleno = 1 (0x1), region = 58 }

</bundles_post_ra>
